<compile_context>
chip_gen: v6e
topology: v6e:2x2x1
jax: 0.10.0
libtpu: 0.0.40
codegen_flags: <defaults>
</compile_context>

<pallas_src>
import jax
import jax.numpy as jnp
from jax.experimental import pallas as pl
from jax.experimental.pallas import tpu as pltpu


def _round_up(n, m):
    return ((n + m - 1) // m) * m


def mlp_kernel(x_ref, w1_ref, b1_ref, w2_ref, b2_ref, w3_ref, b3_ref, o_ref):
    # Hidden layer 1: bf16 x bf16 -> f32 on the MXU, f32 bias + ReLU on the VPU.
    h = jnp.dot(x_ref[...], w1_ref[...], preferred_element_type=jnp.float32)
    h = jnp.maximum(h + b1_ref[...], 0.0)

    # Hidden layer 2: cast activations to bf16 for the MXU, accumulate in f32.
    h = jnp.dot(h.astype(jnp.bfloat16), w2_ref[...],
                preferred_element_type=jnp.float32)
    h = jnp.maximum(h + b2_ref[...], 0.0)

    # Output layer (out_dim == 1): keep it off the MXU.
    # VPU elementwise multiply + XLU cross-lane reduce, all in f32.
    z = jnp.sum(h * w3_ref[...], axis=-1, keepdims=True) + b3_ref[...]

    # Sigmoid: exp on the EUP, approximate reciprocal on the EUP (free slots).
    o_ref[...] = pl.reciprocal(1.0 + jnp.exp(-z), approx=True).astype(o_ref.dtype)


def binary_classification_forward(x, params, *, block_rows=256):
    """Fused MLP forward.  params = [(w1, b1), (w2, b2), (w3, b3)];
    w_i is (in_dim, out_dim), b_i is (1, out_dim).  Returns (batch, 1) f32."""
    (w1, b1), (w2, b2), (w3, b3) = params
    B, D = x.shape
    H1 = w1.shape[1]
    H2 = w2.shape[1]

    # Batch tile: as large as requested, sublane (8) aligned, never larger than
    # the (padded) batch.
    TB = max(8, min(block_rows, _round_up(B, 8)))
    TB = _round_up(TB, 8)
    B_pad = _round_up(B, TB)
    n_tiles = pl.cdiv(B_pad, TB)

    # bf16 operands for the MXU matmuls (f32 accumulation happens in-kernel).
    x_bf = x.astype(jnp.bfloat16)
    if B_pad != B:
        x_bf = jnp.pad(x_bf, ((0, B_pad - B), (0, 0)))
    w1_bf = w1.astype(jnp.bfloat16)
    w2_bf = w2.astype(jnp.bfloat16)
    b1_f = b1.astype(jnp.float32)
    b2_f = b2.astype(jnp.float32)
    # Output layer stays on the VPU/XLU in f32: keep w3 as a (1, H2) row.
    w3_row = w3.reshape(1, H2).astype(jnp.float32)
    b3_2d = b3.reshape(1, 1).astype(jnp.float32)

    tiled = lambda i: (i, 0)      # x / output: new batch tile each grid step
    resident = lambda i: (0, 0)   # weights / biases: VMEM-resident across steps

    out = pl.pallas_call(
        mlp_kernel,
        out_shape=jax.ShapeDtypeStruct((B_pad, 1), jnp.float32),
        grid=(n_tiles,),
        in_specs=[
            pl.BlockSpec((TB, D), tiled),
            pl.BlockSpec((D, H1), resident),
            pl.BlockSpec((1, H1), resident),
            pl.BlockSpec((H1, H2), resident),
            pl.BlockSpec((1, H2), resident),
            pl.BlockSpec((1, H2), resident),
            pl.BlockSpec((1, 1), resident),
        ],
        out_specs=pl.BlockSpec((TB, 1), tiled),
        compiler_params=pltpu.CompilerParams(
            dimension_semantics=("parallel",),
        ),
    )(x_bf, w1_bf, b1_f, w2_bf, b2_f, w3_row, b3_2d)

    return out[:B]


def init_params(key, input_dim, hidden_layers):
    """Deterministic init mirroring nn.Linear's default U(-1/sqrt(fan_in), 1/sqrt(fan_in))."""
    dims = [input_dim] + list(hidden_layers) + [1]
    params = []
    for i in range(len(dims) - 1):
        fan_in, fan_out = dims[i], dims[i + 1]
        key, kw, kb = jax.random.split(key, 3)
        bound = 1.0 / jnp.sqrt(jnp.float32(fan_in))
        w = jax.random.uniform(kw, (fan_in, fan_out), jnp.float32, -bound, bound)
        b = jax.random.uniform(kb, (1, fan_out), jnp.float32, -bound, bound)
        params.append((w, b))
    return params


def reference_forward(x, params, matmul_dtype=jnp.float32):
    """Pure-JAX reference.  With matmul_dtype=bf16 it matches the kernel's
    precision recipe (bf16 MXU operands, f32 accumulate, f32 final layer)."""
    (w1, b1), (w2, b2), (w3, b3) = params
    d = matmul_dtype
    h = jnp.maximum(
        jnp.dot(x.astype(d), w1.astype(d), preferred_element_type=jnp.float32) + b1, 0.0)
    h = jnp.maximum(
        jnp.dot(h.astype(d), w2.astype(d), preferred_element_type=jnp.float32) + b2, 0.0)
    z = jnp.dot(h, w3) + b3
    return jax.nn.sigmoid(z)


if __name__ == "__main__":
    key = jax.random.PRNGKey(0)

    # Small tabular-clinical shapes; batch large enough to exercise the batch
    # grid (4 tiles of 256 rows) and the parallel axis.
    batch = 1024
    input_dim = 16
    hidden_layers = [32, 16]   # corresponds to layers = [[32, 16]] in the PyTorch script

    key, kx, kp = jax.random.split(key, 3)
    x = jax.random.normal(kx, (batch, input_dim), jnp.float32)
    params = init_params(kp, input_dim, hidden_layers)

    out = binary_classification_forward(x, params, block_rows=256)
    out = jax.block_until_ready(out)
    assert out.shape == (batch, 1)

    # Precision-matched reference (bf16 matmuls) -> tight tolerance.
    ref_bf16 = reference_forward(x, params, matmul_dtype=jnp.bfloat16)
    assert jnp.allclose(out, ref_bf16, atol=5e-3, rtol=5e-3), "mismatch vs bf16-matched reference"

    # Full-f32 reference -> loose tolerance (bf16 MXU operands + approx reciprocal).
    ref_f32 = reference_forward(x, params, matmul_dtype=jnp.float32)
    assert jnp.allclose(out, ref_f32, atol=3e-2, rtol=3e-2), "mismatch vs f32 reference"

    print("KERNEL_OK")
</pallas_src>

<mosaic_0001>
module attributes {stable_mosaic.version = 11 : i64} {
  func.func @mlp_kernel(%arg0: i32, %arg1: memref<256x16xbf16, #tpu.memory_space<vmem>>, %arg2: memref<16x32xbf16, #tpu.memory_space<vmem>>, %arg3: memref<1x32xf32, #tpu.memory_space<vmem>>, %arg4: memref<32x16xbf16, #tpu.memory_space<vmem>>, %arg5: memref<1x16xf32, #tpu.memory_space<vmem>>, %arg6: memref<1x16xf32, #tpu.memory_space<vmem>>, %arg7: memref<1x1xf32, #tpu.memory_space<vmem>>, %arg8: memref<256x1xf32, #tpu.memory_space<vmem>>) attributes {dimension_semantics = [#tpu.dimension_semantics<parallel>], iteration_bounds = array<i64: 4>, scalar_prefetch = 0 : i64, scratch_operands = 0 : i64, tpu.core_type = #tpu.core_type<tc>, window_params = [{transform_indices = @transform_0, window_bounds = array<i64: 256, 16>}, {pipeline_mode = #tpu.pipeline_mode<synchronous>, transform_indices = @transform_1, window_bounds = array<i64: 16, 32>}, {pipeline_mode = #tpu.pipeline_mode<synchronous>, transform_indices = @transform_2, window_bounds = array<i64: 1, 32>}, {pipeline_mode = #tpu.pipeline_mode<synchronous>, transform_indices = @transform_3, window_bounds = array<i64: 32, 16>}, {pipeline_mode = #tpu.pipeline_mode<synchronous>, transform_indices = @transform_4, window_bounds = array<i64: 1, 16>}, {pipeline_mode = #tpu.pipeline_mode<synchronous>, transform_indices = @transform_5, window_bounds = array<i64: 1, 16>}, {pipeline_mode = #tpu.pipeline_mode<synchronous>, transform_indices = @transform_6, window_bounds = array<i64: 1, 1>}, {transform_indices = @transform_7, window_bounds = array<i64: 256, 1>}]} {
    %c0 = arith.constant 0 : index
    %c0_0 = arith.constant 0 : index
    %0 = vector.load %arg1[%c0, %c0_0] : memref<256x16xbf16, #tpu.memory_space<vmem>>, vector<256x16xbf16>
    %c0_1 = arith.constant 0 : index
    %c0_2 = arith.constant 0 : index
    %1 = vector.load %arg2[%c0_1, %c0_2] : memref<16x32xbf16, #tpu.memory_space<vmem>>, vector<16x32xbf16>
    %cst = arith.constant dense<0.000000e+00> : vector<256x32xf32>
    %2 = tpu.matmul %0, %1, %cst {dimension_numbers = #tpu.dot_dimension_numbers<[1], [0], [0], [1], [0, 0, 1, 1], [], []>} : vector<256x16xbf16>, vector<16x32xbf16>, vector<256x32xf32> -> vector<256x32xf32>
    %c0_3 = arith.constant 0 : index
    %c0_4 = arith.constant 0 : index
    %3 = vector.load %arg3[%c0_3, %c0_4] : memref<1x32xf32, #tpu.memory_space<vmem>>, vector<1x32xf32>
    %4 = vector.broadcast %3 : vector<1x32xf32> to vector<256x32xf32>
    %5 = arith.addf %2, %4 : vector<256x32xf32>
    %cst_5 = arith.constant 0.000000e+00 : f32
    %6 = vector.broadcast %cst_5 : f32 to vector<256x32xf32>
    %7 = arith.maximumf %5, %6 : vector<256x32xf32>
    %8 = arith.truncf %7 : vector<256x32xf32> to vector<256x32xbf16>
    %c0_6 = arith.constant 0 : index
    %c0_7 = arith.constant 0 : index
    %9 = vector.load %arg4[%c0_6, %c0_7] : memref<32x16xbf16, #tpu.memory_space<vmem>>, vector<32x16xbf16>
    %cst_8 = arith.constant dense<0.000000e+00> : vector<256x16xf32>
    %10 = tpu.matmul %8, %9, %cst_8 {dimension_numbers = #tpu.dot_dimension_numbers<[1], [0], [0], [1], [0, 0, 1, 1], [], []>} : vector<256x32xbf16>, vector<32x16xbf16>, vector<256x16xf32> -> vector<256x16xf32>
    %c0_9 = arith.constant 0 : index
    %c0_10 = arith.constant 0 : index
    %11 = vector.load %arg5[%c0_9, %c0_10] : memref<1x16xf32, #tpu.memory_space<vmem>>, vector<1x16xf32>
    %12 = vector.broadcast %11 : vector<1x16xf32> to vector<256x16xf32>
    %13 = arith.addf %10, %12 : vector<256x16xf32>
    %cst_11 = arith.constant 0.000000e+00 : f32
    %14 = vector.broadcast %cst_11 : f32 to vector<256x16xf32>
    %15 = arith.maximumf %13, %14 : vector<256x16xf32>
    %c0_12 = arith.constant 0 : index
    %c0_13 = arith.constant 0 : index
    %16 = vector.load %arg6[%c0_12, %c0_13] : memref<1x16xf32, #tpu.memory_space<vmem>>, vector<1x16xf32>
    %17 = vector.broadcast %16 : vector<1x16xf32> to vector<256x16xf32>
    %18 = arith.mulf %15, %17 : vector<256x16xf32>
    %cst_14 = arith.constant dense<0.000000e+00> : vector<256xf32>
    %19 = vector.multi_reduction <add>, %18, %cst_14 [1] : vector<256x16xf32> to vector<256xf32>
    %20 = vector.shape_cast %19 : vector<256xf32> to vector<256x1xf32>
    %c0_15 = arith.constant 0 : index
    %c0_16 = arith.constant 0 : index
    %21 = vector.load %arg7[%c0_15, %c0_16] : memref<1x1xf32, #tpu.memory_space<vmem>>, vector<1x1xf32>
    %22 = vector.broadcast %21 : vector<1x1xf32> to vector<256x1xf32>
    %23 = arith.addf %20, %22 : vector<256x1xf32>
    %cst_17 = arith.constant 0.000000e+00 : f32
    %24 = vector.broadcast %cst_17 : f32 to vector<256x1xf32>
    %25 = arith.subf %24, %23 : vector<256x1xf32>
    %26 = math.exp %25 : vector<256x1xf32>
    %cst_18 = arith.constant 1.000000e+00 : f32
    %27 = vector.broadcast %cst_18 : f32 to vector<256x1xf32>
    %28 = arith.addf %27, %26 : vector<256x1xf32>
    %29 = tpu.reciprocal %28 {approx = true} : vector<256x1xf32> -> vector<256x1xf32>
    %c0_19 = arith.constant 0 : index
    %c0_20 = arith.constant 0 : index
    %30 = vector.load %arg8[%c0_19, %c0_20] : memref<256x1xf32, #tpu.memory_space<vmem>>, vector<256x1xf32>
    tpu.vector_store %arg8[%c0_19, %c0_20], %29 {strides = array<i32>} : memref<256x1xf32, #tpu.memory_space<vmem>>, vector<256x1xf32>,
    return
  }
  func.func @transform_0(%arg0: i32) -> (i32, i32) {
    %c0_i32 = arith.constant 0 : i32
    %c0_i32_0 = arith.constant 0 : i32
    return %arg0, %c0_i32 : i32, i32
  }
  func.func @transform_1(%arg0: i32) -> (i32, i32) {
    %c0_i32 = arith.constant 0 : i32
    %c0_i32_0 = arith.constant 0 : i32
    %c0_i32_1 = arith.constant 0 : i32
    return %c0_i32, %c0_i32_0 : i32, i32
  }
  func.func @transform_2(%arg0: i32) -> (i32, i32) {
    %c0_i32 = arith.constant 0 : i32
    %c0_i32_0 = arith.constant 0 : i32
    %c0_i32_1 = arith.constant 0 : i32
    return %c0_i32, %c0_i32_0 : i32, i32
  }
  func.func @transform_3(%arg0: i32) -> (i32, i32) {
    %c0_i32 = arith.constant 0 : i32
    %c0_i32_0 = arith.constant 0 : i32
    %c0_i32_1 = arith.constant 0 : i32
    return %c0_i32, %c0_i32_0 : i32, i32
  }
  func.func @transform_4(%arg0: i32) -> (i32, i32) {
    %c0_i32 = arith.constant 0 : i32
    %c0_i32_0 = arith.constant 0 : i32
    %c0_i32_1 = arith.constant 0 : i32
    return %c0_i32, %c0_i32_0 : i32, i32
  }
  func.func @transform_5(%arg0: i32) -> (i32, i32) {
    %c0_i32 = arith.constant 0 : i32
    %c0_i32_0 = arith.constant 0 : i32
    %c0_i32_1 = arith.constant 0 : i32
    return %c0_i32, %c0_i32_0 : i32, i32
  }
  func.func @transform_6(%arg0: i32) -> (i32, i32) {
    %c0_i32 = arith.constant 0 : i32
    %c0_i32_0 = arith.constant 0 : i32
    %c0_i32_1 = arith.constant 0 : i32
    return %c0_i32, %c0_i32_0 : i32, i32
  }
  func.func @transform_7(%arg0: i32) -> (i32, i32) {
    %c0_i32 = arith.constant 0 : i32
    %c0_i32_0 = arith.constant 0 : i32
    return %arg0, %c0_i32 : i32, i32
  }
}

</mosaic_0001>

<bundles_post_ra>
// kernel: tpu_custom_call.1
= control target key start
LH: loop header
LB: loop body
LE: loop exit
PB: predicated region body
PF: predicated region fallthrough
CT: control target
= control target key end

     0   :  { %s1735_s26 = smov 0   ;;  %s2058_s0 = inlined_call_operand.vmem [shape: bf16[1024,16], index: 0, kind: input, shape index: {}]   ;;  %s2059_s1 = inlined_call_operand.vmem [shape: bf16[16,32], index: 1, kind: input, shape index: {}]   ;;  %s2060_s2 = inlined_call_operand.vmem [shape: f32[1,32], index: 2, kind: input, shape index: {}]   ;;  %s2061_s3 = inlined_call_operand.vmem [shape: bf16[32,16], index: 3, kind: input, shape index: {}]   ;;  %s2062_s4 = inlined_call_operand.vmem [shape: f32[1,16], index: 4, kind: input, shape index: {}]   ;;  %s2063_s5 = inlined_call_operand.vmem [shape: f32[1,16], index: 5, kind: input, shape index: {}]   ;;  %s2064_s6 = inlined_call_operand.<no memory space> [shape: f32[1,1], index: 6, kind: input, shape index: {}]   ;;  %s2065_s7 = inlined_call_operand.vmem [shape: f32[1024,1], index: 7, kind: output, shape index: {}]  }
   0x1   :  { %v12_v0 = vstv %s2064_s6 }
   0x2   :  { %13 = vst [vmem:[#allocation2] sm:$0x1] %v12_v0 }
   0x3 LB: > { %s1358_s27 = sadd.s32 4294967295, %s1690_s26   ;;  %p1362_p0 = scmp.ge.s32.totalorder %s1690_s26, 1  ;;  %s1690_s26 = sphi %s1735_s26, %s19_s26  }
   0x4   : > { %p240_p1 = scmp.lt.s32.totalorder %s1690_s26, 5 }
   0x6   : > { %p241_p2 = pnand %p1362_p0, %p240_p1 }
   0x7   : > { %s1363_s6 = sshll.u32 (!%p241_p2), %s1358_s27, 5 }
   0x8   : > { %244 = sbr.rel (%p241_p2) target bundleno = 667 (0x29b), region = 48  ;;  %p273_p3 = scmp.lt.s32.totalorder (!%p241_p2), %s1363_s6, 127 }
   0xd   : > { %v1537_v1 = vld [vmem:[%s2059_s1] sm:$0xff]   ;;  %s2067_s6 = smov (!%p273_p3, %s1363_s6), 127  ;;  %vm412_vm0 = vcmask 130048   ;;  %v1554_v18 = vld [vmem:[%s2061_s3 + $0x8] sm:$0xff]   ;;  %vm693_vm1 = vcmask 261120   ;;  %vm1269_vm2 = vcmask 7168  }
   0xe   : > { %1459 = vmatprep.subr.bf16.mxu0 %v1537_v1  ;;  %s1364_s30 = sshll.u32 %s2067_s6, 2  ;;  %1493 = vmatprep.subr.bf16.mxu1 %v1554_v18  ;;  %v1555_v19 = vld [vmem:[%s2061_s3] sm:$0xff]   ;;  %s1366_s21 = sshll.u32 %s2067_s6, 3 }
   0xf   : > { %1460 = vmatpush3.bf16.msra.mxu0 %v1537_v1  ;;  %s1752_s10 = scalar_lea.vmem %s2058_s0, %s1364_s30  ;;  %1494 = vmatpush3.bf16.msra.mxu1 %v1554_v18  ;;  %v1795_v22 = vld [vmem:[%s2060_s2] ss:$0 sm:$0xff]  ;;  %s1972_s24 = scalar_lea.vmem %s2065_s7, %s1366_s21 }
  0x10   : > { %v1538_v2 = vld [vmem:[%s1752_s10] sm:$0xff]   ;;  %v1539_v3 = vld [vmem:[%s1752_s10 + $0x8] sm:$0xff]   ;;  %v1540_v4 = vld [vmem:[%s1752_s10 + $0x10] sm:$0xff]   ;;  %1495 = vmatprep.subr.bf16.mxu1 %v1555_v19 }
  0x11   : > { %1461 = vmatprep.mubr.msk.bf16.mxu0 %vm412_vm0, %v1538_v2  ;;  %v1541_v5 = vld [vmem:[%s1752_s10 + $0x18] sm:$0xff]   ;;  %v1542_v6 = vld [vmem:[%s1752_s10 + $0x20] sm:$0xff]   ;;  %v1543_v7 = vld [vmem:[%s1752_s10 + $0x28] sm:$0xff]  }
  0x12   : > { %1462 = vmatmul.mubr.msk.bf16.vlgmr.msra.gmra.mxu0 %vm412_vm0, %v1539_v3  ;;  %v1544_v8 = vld [vmem:[%s1752_s10 + $0x30] sm:$0xff]   ;;  %v1545_v9 = vld [vmem:[%s1752_s10 + $0x38] sm:$0xff]   ;;  %v1546_v10 = vld [vmem:[%s1752_s10 + $0x40] sm:$0xff]  }
  0x13   : > { %1465 = vmatprep.mubr.msk.bf16.mxu0 %vm412_vm0, %v1540_v4  ;;  %v1547_v11 = vld [vmem:[%s1752_s10 + $0x48] sm:$0xff]   ;;  %v1548_v12 = vld [vmem:[%s1752_s10 + $0x50] sm:$0xff]   ;;  %v1549_v13 = vld [vmem:[%s1752_s10 + $0x58] sm:$0xff]   ;;  %1496 = vmatpush3.bf16.msra.mxu1 %v1555_v19 }
  0x14   : > { %v1550_v14 = vld [vmem:[%s1752_s10 + $0x60] sm:$0xff]   ;;  %v1551_v15 = vld [vmem:[%s1752_s10 + $0x68] sm:$0xff]   ;;  %v1552_v16 = vld [vmem:[%s1752_s10 + $0x70] sm:$0xff]  }
  0x15   : > { %v1553_v17 = vld [vmem:[%s1752_s10 + $0x78] sm:$0xff]  }
  0x1a   : > { %1466 = vmatmul.mubr.msk.bf16.gmra.mxu0 %vm412_vm0, %v1541_v5 }
  0x1b   : > { %1469 = vmatprep.mubr.msk.bf16.mxu0 %vm412_vm0, %v1542_v6 }
  0x22   : > { %1470 = vmatmul.mubr.msk.bf16.gmra.mxu0 %vm412_vm0, %v1543_v7 }
  0x23   : > { %1473 = vmatprep.mubr.msk.bf16.mxu0 %vm412_vm0, %v1544_v8 }
  0x2a   : > { %1474 = vmatmul.mubr.msk.bf16.gmra.mxu0 %vm412_vm0, %v1545_v9 }
  0x2b   : > { %1477 = vmatprep.mubr.msk.bf16.mxu0 %vm412_vm0, %v1546_v10 }
  0x32   : > { %1478 = vmatmul.mubr.msk.bf16.gmra.mxu0 %vm412_vm0, %v1547_v11 }
  0x33   : > { %1481 = vmatprep.mubr.msk.bf16.mxu0 %vm412_vm0, %v1548_v12 }
  0x3a   : > { %1482 = vmatmul.mubr.msk.bf16.gmra.mxu0 %vm412_vm0, %v1549_v13 }
  0x3b   : > { %1485 = vmatprep.mubr.msk.bf16.mxu0 %vm412_vm0, %v1550_v14 }
  0x42   : > { %1486 = vmatmul.mubr.msk.bf16.gmra.mxu0 %vm412_vm0, %v1551_v15 }
  0x43   : > { %1489 = vmatprep.mubr.msk.bf16.mxu0 %vm412_vm0, %v1552_v16 }
  0x4a   : > { %1490 = vmatmul.mubr.msk.bf16.gmra.mxu0 %vm412_vm0, %v1553_v17 }
  0xd2   : > { %v1463_v20 = vpop.f32.mrf.mxu0 }
  0xd3   : > { %v504_v26 = vadd.f32 %v1463_v20, %v1795_v22 }
  0xd4   : > { %v495_v21 = vpop.f32.mrf.mxu0 }
  0xd5   : > { %v496_v24 = vadd.f32 %v1795_v22, %v495_v21  ;;  %v624_v33 = vmax.f32 %v504_v26, 0.0 }
  0xd6   : > { %v1464_v23 = vpop.f32.mrf.mxu0 }
  0xd7   : > { %v507_v25 = vadd.f32 %v1464_v23, %v1795_v22  ;;  %v622_v31 = vmax.f32 %v496_v24, 0.0 }
  0xd8   : > { %v498_v27 = vpop.f32.mrf.mxu0 }
  0xd9   : > { %v499_v28 = vadd.f32 %v1795_v22, %v498_v27  ;;  %v625_v29 = vmax.f32 %v507_v25, 0.0 }
  0xda   : > { %v1467_v30 = vpop.f32.mrf.mxu0 }
  0xdb   : > { %v623_v32 = vmax.f32 %v499_v28, 0.0  ;;  %v655_v36 = vpack.c.bf16 %v625_v29, %v624_v33  ;;  %v520_v40 = vadd.f32 %v1467_v30, %v1795_v22 }
  0xdc   : > { %v511_v34 = vpop.f32.mrf.mxu0 }
  0xdd   : > { %v654_v35 = vpack.c.bf16 %v623_v32, %v622_v31  ;;  %v512_v38 = vadd.f32 %v1795_v22, %v511_v34  ;;  %v628_v47 = vmax.f32 %v520_v40, 0.0 }
  0xde   : > { %v1468_v37 = vpop.f32.mrf.mxu0 }
  0xdf   : > { %v523_v39 = vadd.f32 %v1468_v37, %v1795_v22  ;;  %1497 = vmatprep.mubr.msk.bf16.mxu1 %vm693_vm1, %v654_v35  ;;  %v626_v45 = vmax.f32 %v512_v38, 0.0 }
  0xe0   : > { %v514_v41 = vpop.f32.mrf.mxu0  ;;  %1498 = vmatmul.mubr.msk.bf16.vlgmr.msra.gmra.mxu1 %vm693_vm1, %v655_v36 }
  0xe1   : > { %v515_v42 = vadd.f32 %v1795_v22, %v514_v41  ;;  %v629_v43 = vmax.f32 %v523_v39, 0.0 }
  0xe2   : > { %v1471_v44 = vpop.f32.mrf.mxu0 }
  0xe3   : > { %v627_v46 = vmax.f32 %v515_v42, 0.0  ;;  %v657_v50 = vpack.c.bf16 %v629_v43, %v628_v47  ;;  %v536_v54 = vadd.f32 %v1471_v44, %v1795_v22 }
  0xe4   : > { %v527_v48 = vpop.f32.mrf.mxu0 }
  0xe5   : > { %v656_v49 = vpack.c.bf16 %v627_v46, %v626_v45  ;;  %v528_v52 = vadd.f32 %v1795_v22, %v527_v48  ;;  %v632_v61 = vmax.f32 %v536_v54, 0.0 }
  0xe6   : > { %v1472_v51 = vpop.f32.mrf.mxu0 }
  0xe7   : > { %v539_v53 = vadd.f32 %v1472_v51, %v1795_v22  ;;  %1501 = vmatprep.mubr.msk.bf16.mxu1 %vm693_vm1, %v656_v49  ;;  %v630_v59 = vmax.f32 %v528_v52, 0.0 }
  0xe8   : > { %v530_v55 = vpop.f32.mrf.mxu0  ;;  %1502 = vmatmul.mubr.msk.bf16.gmra.mxu1 %vm693_vm1, %v657_v50 }
  0xe9   : > { %v531_v56 = vadd.f32 %v1795_v22, %v530_v55  ;;  %v633_v57 = vmax.f32 %v539_v53, 0.0 }
  0xea   : > { %v1475_v58 = vpop.f32.mrf.mxu0 }
  0xeb   : > { %v631_v60 = vmax.f32 %v531_v56, 0.0  ;;  %v659_v0 = vpack.c.bf16 %v633_v57, %v632_v61  ;;  %v552_v4 = vadd.f32 %v1475_v58, %v1795_v22 }
  0xec   : > { %v543_v62 = vpop.f32.mrf.mxu0 }
  0xed   : > { %v658_v63 = vpack.c.bf16 %v631_v60, %v630_v59  ;;  %v544_v2 = vadd.f32 %v1795_v22, %v543_v62  ;;  %v636_v11 = vmax.f32 %v552_v4, 0.0 }
  0xee   : > { %v1476_v1 = vpop.f32.mrf.mxu0 }
  0xef   : > { %v555_v3 = vadd.f32 %v1476_v1, %v1795_v22  ;;  %1505 = vmatprep.mubr.msk.bf16.mxu1 %vm693_vm1, %v658_v63  ;;  %v634_v9 = vmax.f32 %v544_v2, 0.0 }
  0xf0   : > { %v546_v5 = vpop.f32.mrf.mxu0  ;;  %1506 = vmatmul.mubr.msk.bf16.gmra.mxu1 %vm693_vm1, %v659_v0 }
  0xf1   : > { %v547_v6 = vadd.f32 %v1795_v22, %v546_v5  ;;  %v637_v7 = vmax.f32 %v555_v3, 0.0 }
  0xf2   : > { %v1479_v8 = vpop.f32.mrf.mxu0 }
  0xf3   : > { %v635_v10 = vmax.f32 %v547_v6, 0.0  ;;  %v661_v14 = vpack.c.bf16 %v637_v7, %v636_v11  ;;  %v568_v18 = vadd.f32 %v1479_v8, %v1795_v22  ;;  %v1848_v6 = vld [vmem:[%s2062_s4] ss:$0 sm:$0xff] }
  0xf4   : > { %v559_v12 = vpop.f32.mrf.mxu0 }
  0xf5   : > { %v660_v13 = vpack.c.bf16 %v635_v10, %v634_v9  ;;  %v560_v16 = vadd.f32 %v1795_v22, %v559_v12  ;;  %v640_v26 = vmax.f32 %v568_v18, 0.0 }
  0xf6   : > { %v1480_v15 = vpop.f32.mrf.mxu0 }
  0xf7   : > { %v571_v17 = vadd.f32 %v1480_v15, %v1795_v22  ;;  %1509 = vmatprep.mubr.msk.bf16.mxu1 %vm693_vm1, %v660_v13  ;;  %v638_v24 = vmax.f32 %v560_v16, 0.0 }
  0xf8   : > { %v562_v19 = vpop.f32.mrf.mxu0  ;;  %1510 = vmatmul.mubr.msk.bf16.gmra.mxu1 %vm693_vm1, %v661_v14 }
  0xf9   : > { %v563_v20 = vadd.f32 %v1795_v22, %v562_v19  ;;  %v641_v21 = vmax.f32 %v571_v17, 0.0 }
  0xfa   : > { %v1483_v23 = vpop.f32.mrf.mxu0 }
  0xfb   : > { %v639_v25 = vmax.f32 %v563_v20, 0.0  ;;  %v663_v29 = vpack.c.bf16 %v641_v21, %v640_v26  ;;  %v584_v33 = vadd.f32 %v1483_v23, %v1795_v22 }
  0xfc   : > { %v575_v27 = vpop.f32.mrf.mxu0 }
  0xfd   : > { %v662_v28 = vpack.c.bf16 %v639_v25, %v638_v24  ;;  %v576_v31 = vadd.f32 %v1795_v22, %v575_v27  ;;  %v644_v40 = vmax.f32 %v584_v33, 0.0 }
  0xfe   : > { %v1484_v30 = vpop.f32.mrf.mxu0 }
  0xff   : > { %v587_v32 = vadd.f32 %v1484_v30, %v1795_v22  ;;  %1513 = vmatprep.mubr.msk.bf16.mxu1 %vm693_vm1, %v662_v28  ;;  %v642_v38 = vmax.f32 %v576_v31, 0.0 }
 0x100   : > { %v578_v34 = vpop.f32.mrf.mxu0  ;;  %1514 = vmatmul.mubr.msk.bf16.gmra.mxu1 %vm693_vm1, %v663_v29 }
 0x101   : > { %v579_v35 = vadd.f32 %v1795_v22, %v578_v34  ;;  %v645_v36 = vmax.f32 %v587_v32, 0.0 }
 0x102   : > { %v1487_v37 = vpop.f32.mrf.mxu0 }
 0x103   : > { %v643_v39 = vmax.f32 %v579_v35, 0.0  ;;  %v665_v43 = vpack.c.bf16 %v645_v36, %v644_v40  ;;  %v600_v47 = vadd.f32 %v1487_v37, %v1795_v22 }
 0x104   : > { %v591_v41 = vpop.f32.mrf.mxu0 }
 0x105   : > { %v664_v42 = vpack.c.bf16 %v643_v39, %v642_v38  ;;  %v592_v45 = vadd.f32 %v1795_v22, %v591_v41  ;;  %v648_v54 = vmax.f32 %v600_v47, 0.0 }
 0x106   : > { %v1488_v44 = vpop.f32.mrf.mxu0 }
 0x107   : > { %v603_v46 = vadd.f32 %v1488_v44, %v1795_v22  ;;  %1517 = vmatprep.mubr.msk.bf16.mxu1 %vm693_vm1, %v664_v42  ;;  %v646_v52 = vmax.f32 %v592_v45, 0.0 }
 0x108   : > { %v594_v48 = vpop.f32.mrf.mxu0  ;;  %1518 = vmatmul.mubr.msk.bf16.gmra.mxu1 %vm693_vm1, %v665_v43 }
 0x109   : > { %v595_v49 = vadd.f32 %v1795_v22, %v594_v48  ;;  %v649_v50 = vmax.f32 %v603_v46, 0.0 }
 0x10a   : > { %v1491_v51 = vpop.f32.mrf.mxu0 }
 0x10b   : > { %v647_v53 = vmax.f32 %v595_v49, 0.0  ;;  %v667_v57 = vpack.c.bf16 %v649_v50, %v648_v54  ;;  %v616_v61 = vadd.f32 %v1491_v51, %v1795_v22 }
 0x10c   : > { %v607_v55 = vpop.f32.mrf.mxu0 }
 0x10d   : > { %v666_v56 = vpack.c.bf16 %v647_v53, %v646_v52  ;;  %v608_v59 = vadd.f32 %v1795_v22, %v607_v55  ;;  %v652_v3 = vmax.f32 %v616_v61, 0.0 }
 0x10e   : > { %v1492_v58 = vpop.f32.mrf.mxu0 }
 0x10f   : > { %v619_v60 = vadd.f32 %v1492_v58, %v1795_v22  ;;  %1521 = vmatprep.mubr.msk.bf16.mxu1 %vm693_vm1, %v666_v56  ;;  %v650_v1 = vmax.f32 %v608_v59, 0.0 }
 0x110   : > { %v610_v62 = vpop.f32.mrf.mxu0  ;;  %1522 = vmatmul.mubr.msk.bf16.gmra.mxu1 %vm693_vm1, %v667_v57 }
 0x111   : > { %v611_v63 = vadd.f32 %v1795_v22, %v610_v62  ;;  %v653_v0 = vmax.f32 %v619_v60, 0.0  ;;  %v1854_v22 = vld [vmem:[%s2063_s5] ss:$0 sm:$0xff] }
 0x113   : > { %v651_v2 = vmax.f32 %v611_v63, 0.0  ;;  %v669_v5 = vpack.c.bf16 %v653_v0, %v652_v3 }
 0x115   : > { %v668_v4 = vpack.c.bf16 %v651_v2, %v650_v1 }
 0x117   : > { %1525 = vmatprep.mubr.msk.bf16.mxu1 %vm693_vm1, %v668_v4 }
 0x118   : > { %1526 = vmatmul.mubr.msk.bf16.gmra.mxu1 %vm693_vm1, %v669_v5 }
 0x1a0   : > { %v1499_v7 = vpop.f32.mrf.mxu1 }
 0x1a1   : > { %v785_v8 = vadd.f32 %v1499_v7, %v1848_v6 }
 0x1a2   : > { %v776_v9 = vpop.f32.mrf.mxu1 }
 0x1a3   : > { %v905_v10 = vmax.f32 %v785_v8, 0.0  ;;  %v777_v11 = vadd.f32 %v1848_v6, %v776_v9 }
 0x1a4   : > { %v1500_v12 = vpop.f32.mrf.mxu1 }
 0x1a5   : > { %v903_v13 = vmax.f32 %v777_v11, 0.0  ;;  %v788_v14 = vadd.f32 %v1500_v12, %v1848_v6  ;;  %v944_v15 = vmul.f32 %v1854_v22, %v905_v10 }
 0x1a6   : > { %v779_v16 = vpop.f32.mrf.mxu1 }
 0x1a7   : > { %v906_v17 = vmax.f32 %v788_v14, 0.0  ;;  %v780_v18 = vadd.f32 %v1848_v6, %v779_v16  ;;  %v980_v19 = vsel %vm412_vm0, %v944_v15, 0.0  ;;  %v942_v20 = vmul.f32 %v1854_v22, %v903_v13 }
 0x1a8   : > { %981 = vadd.xlane.f32.xlu1 %v980_v19  ;;  %v1503_v21 = vpop.f32.mrf.mxu1 }
 0x1a9   : > { %v904_v23 = vmax.f32 %v780_v18, 0.0  ;;  %v801_v24 = vadd.f32 %v1503_v21, %v1848_v6  ;;  %v974_v25 = vsel %vm412_vm0, %v942_v20, 0.0  ;;  %v945_v26 = vmul.f32 %v1854_v22, %v906_v17 }
 0x1aa   : > { %v792_v27 = vpop.f32.mrf.mxu1  ;;  %975 = vadd.xlane.f32.xlu0 %v974_v25 }
 0x1ab   : > { %v909_v28 = vmax.f32 %v801_v24, 0.0  ;;  %v793_v29 = vadd.f32 %v1848_v6, %v792_v27  ;;  %v983_v30 = vsel %vm412_vm0, %v945_v26, 0.0  ;;  %v943_v31 = vmul.f32 %v1854_v22, %v904_v23 }
 0x1ac   : > { %984 = vadd.xlane.f32.xlu1 %v983_v30  ;;  %v1504_v32 = vpop.f32.mrf.mxu1 }
 0x1ad   : > { %v907_v33 = vmax.f32 %v793_v29, 0.0  ;;  %v804_v34 = vadd.f32 %v1504_v32, %v1848_v6  ;;  %v977_v35 = vsel %vm412_vm0, %v943_v31, 0.0  ;;  %v948_v36 = vmul.f32 %v1854_v22, %v909_v28 }
 0x1ae   : > { %v795_v37 = vpop.f32.mrf.mxu1  ;;  %978 = vadd.xlane.f32.xlu0 %v977_v35 }
 0x1af   : > { %v910_v38 = vmax.f32 %v804_v34, 0.0  ;;  %v796_v39 = vadd.f32 %v1848_v6, %v795_v37  ;;  %v992_v41 = vsel %vm412_vm0, %v948_v36, 0.0  ;;  %v946_v45 = vmul.f32 %v1854_v22, %v907_v33 }
 0x1b0   : > { %v1507_v40 = vpop.f32.mrf.mxu1 }
 0x1b1   : > { %v908_v42 = vmax.f32 %v796_v39, 0.0  ;;  %v817_v43 = vadd.f32 %v1507_v40, %v1848_v6  ;;  %v949_v44 = vmul.f32 %v1854_v22, %v910_v38  ;;  %v986_v54 = vsel %vm412_vm0, %v946_v45, 0.0 }
 0x1b2   : > { %v808_v46 = vpop.f32.mrf.mxu1  ;;  %993 = vadd.xlane.f32.xlu0 %v992_v41 }
 0x1b3   : > { %v913_v47 = vmax.f32 %v817_v43, 0.0  ;;  %v809_v48 = vadd.f32 %v1848_v6, %v808_v46  ;;  %v995_v49 = vsel %vm412_vm0, %v949_v44, 0.0  ;;  %v947_v50 = vmul.f32 %v1854_v22, %v908_v42 }
 0x1b4   : > { %996 = vadd.xlane.f32.xlu1 %v995_v49  ;;  %v1508_v51 = vpop.f32.mrf.mxu1 }
 0x1b5   : > { %v911_v52 = vmax.f32 %v809_v48, 0.0  ;;  %v820_v53 = vadd.f32 %v1508_v51, %v1848_v6  ;;  %v952_v55 = vmul.f32 %v1854_v22, %v913_v47  ;;  %v989_v59 = vsel %vm412_vm0, %v947_v50, 0.0 }
 0x1b6   : > { %v811_v56 = vpop.f32.mrf.mxu1  ;;  %987 = vadd.xlane.f32.xlu0 %v986_v54 }
 0x1b7   : > { %v914_v57 = vmax.f32 %v820_v53, 0.0  ;;  %v812_v58 = vadd.f32 %v1848_v6, %v811_v56  ;;  %v1004_v61 = vsel %vm412_vm0, %v952_v55, 0.0  ;;  %v950_v1 = vmul.f32 %v1854_v22, %v911_v52 }
 0x1b8   : > { %v1511_v60 = vpop.f32.mrf.mxu1  ;;  %990 = vadd.xlane.f32.xlu1 %v989_v59 }
 0x1b9   : > { %v912_v62 = vmax.f32 %v812_v58, 0.0  ;;  %v833_v63 = vadd.f32 %v1511_v60, %v1848_v6  ;;  %v953_v0 = vmul.f32 %v1854_v22, %v914_v57  ;;  %v998_v11 = vsel %vm412_vm0, %v950_v1, 0.0 }
 0x1ba   : > { %v824_v2 = vpop.f32.mrf.mxu1  ;;  %1005 = vadd.xlane.f32.xlu0 %v1004_v61 }
 0x1bb   : > { %v917_v3 = vmax.f32 %v833_v63, 0.0  ;;  %v825_v4 = vadd.f32 %v1848_v6, %v824_v2  ;;  %v1007_v5 = vsel %vm412_vm0, %v953_v0, 0.0  ;;  %v951_v7 = vmul.f32 %v1854_v22, %v912_v62 }
 0x1bc   : > { %v1512_v8 = vpop.f32.mrf.mxu1  ;;  %1008 = vadd.xlane.f32.xlu1 %v1007_v5 }
 0x1bd   : > { %v915_v9 = vmax.f32 %v825_v4, 0.0  ;;  %v836_v10 = vadd.f32 %v1512_v8, %v1848_v6  ;;  %v956_v12 = vmul.f32 %v1854_v22, %v917_v3  ;;  %v1001_v16 = vsel %vm412_vm0, %v951_v7, 0.0 }
 0x1be   : > { %v827_v13 = vpop.f32.mrf.mxu1  ;;  %999 = vadd.xlane.f32.xlu0 %v998_v11 }
 0x1bf   : > { %v918_v14 = vmax.f32 %v836_v10, 0.0  ;;  %v828_v15 = vadd.f32 %v1848_v6, %v827_v13  ;;  %v1016_v18 = vsel %vm412_vm0, %v956_v12, 0.0  ;;  %v954_v23 = vmul.f32 %v1854_v22, %v915_v9 }
 0x1c0   : > { %v1515_v17 = vpop.f32.mrf.mxu1  ;;  %1002 = vadd.xlane.f32.xlu1 %v1001_v16 }
 0x1c1   : > { %v916_v19 = vmax.f32 %v828_v15, 0.0  ;;  %v849_v20 = vadd.f32 %v1515_v17, %v1848_v6  ;;  %v957_v21 = vmul.f32 %v1854_v22, %v918_v14  ;;  %v1010_v32 = vsel %vm412_vm0, %v954_v23, 0.0 }
 0x1c2   : > { %v840_v24 = vpop.f32.mrf.mxu1  ;;  %1017 = vadd.xlane.f32.xlu0 %v1016_v18 }
 0x1c3   : > { %v921_v25 = vmax.f32 %v849_v20, 0.0  ;;  %v841_v26 = vadd.f32 %v1848_v6, %v840_v24  ;;  %v1019_v27 = vsel %vm412_vm0, %v957_v21, 0.0  ;;  %v955_v28 = vmul.f32 %v1854_v22, %v916_v19 }
 0x1c4   : > { %v1516_v29 = vpop.f32.mrf.mxu1  ;;  %1020 = vadd.xlane.f32.xlu1 %v1019_v27 }
 0x1c5   : > { %v919_v30 = vmax.f32 %v841_v26, 0.0  ;;  %v852_v31 = vadd.f32 %v1516_v29, %v1848_v6  ;;  %v960_v33 = vmul.f32 %v1854_v22, %v921_v25  ;;  %v1013_v37 = vsel %vm412_vm0, %v955_v28, 0.0 }
 0x1c6   : > { %v843_v34 = vpop.f32.mrf.mxu1  ;;  %1011 = vadd.xlane.f32.xlu0 %v1010_v32 }
 0x1c7   : > { %v922_v35 = vmax.f32 %v852_v31, 0.0  ;;  %v844_v36 = vadd.f32 %v1848_v6, %v843_v34  ;;  %v1028_v39 = vsel %vm412_vm0, %v960_v33, 0.0  ;;  %v958_v43 = vmul.f32 %v1854_v22, %v919_v30 }
 0x1c8   : > { %v1519_v38 = vpop.f32.mrf.mxu1  ;;  %1014 = vadd.xlane.f32.xlu1 %v1013_v37 }
 0x1c9   : > { %v920_v40 = vmax.f32 %v844_v36, 0.0  ;;  %v865_v41 = vadd.f32 %v1519_v38, %v1848_v6  ;;  %v961_v42 = vmul.f32 %v1854_v22, %v922_v35  ;;  %v1022_v52 = vsel %vm412_vm0, %v958_v43, 0.0  ;;  %v1951_v43 = vld [vmem:[#allocation2] ss:$0 sm:$0xff] }
 0x1ca   : > { %v856_v44 = vpop.f32.mrf.mxu1  ;;  %1029 = vadd.xlane.f32.xlu0 %v1028_v39 }
 0x1cb   : > { %v925_v45 = vmax.f32 %v865_v41, 0.0  ;;  %v857_v46 = vadd.f32 %v1848_v6, %v856_v44  ;;  %v1031_v47 = vsel %vm412_vm0, %v961_v42, 0.0  ;;  %v959_v48 = vmul.f32 %v1854_v22, %v920_v40 }
 0x1cc   : > { %v1520_v49 = vpop.f32.mrf.mxu1  ;;  %1032 = vadd.xlane.f32.xlu1 %v1031_v47 }
 0x1cd   : > { %v923_v50 = vmax.f32 %v857_v46, 0.0  ;;  %v868_v51 = vadd.f32 %v1520_v49, %v1848_v6  ;;  %v964_v53 = vmul.f32 %v1854_v22, %v925_v45  ;;  %v1025_v57 = vsel %vm412_vm0, %v959_v48, 0.0 }
 0x1ce   : > { %v859_v54 = vpop.f32.mrf.mxu1  ;;  %1023 = vadd.xlane.f32.xlu0 %v1022_v52 }
 0x1cf   : > { %v926_v55 = vmax.f32 %v868_v51, 0.0  ;;  %v860_v56 = vadd.f32 %v1848_v6, %v859_v54  ;;  %v1040_v59 = vsel %vm412_vm0, %v964_v53, 0.0  ;;  %v962_v63 = vmul.f32 %v1854_v22, %v923_v50 }
 0x1d0   : > { %v1523_v58 = vpop.f32.mrf.mxu1  ;;  %1026 = vadd.xlane.f32.xlu1 %v1025_v57 }
 0x1d1   : > { %v924_v60 = vmax.f32 %v860_v56, 0.0  ;;  %v881_v61 = vadd.f32 %v1523_v58, %v1848_v6  ;;  %v965_v62 = vmul.f32 %v1854_v22, %v926_v55  ;;  %v1034_v9 = vsel %vm412_vm0, %v962_v63, 0.0 }
 0x1d2   : > { %v872_v0 = vpop.f32.mrf.mxu1  ;;  %1041 = vadd.xlane.f32.xlu0 %v1040_v59 }
 0x1d3   : > { %v929_v1 = vmax.f32 %v881_v61, 0.0  ;;  %v873_v2 = vadd.f32 %v1848_v6, %v872_v0  ;;  %v1043_v3 = vsel %vm412_vm0, %v965_v62, 0.0  ;;  %v963_v4 = vmul.f32 %v1854_v22, %v924_v60 }
 0x1d4   : > { %v1524_v5 = vpop.f32.mrf.mxu1  ;;  %1044 = vadd.xlane.f32.xlu1 %v1043_v3 }
 0x1d5   : > { %v927_v7 = vmax.f32 %v873_v2, 0.0  ;;  %v884_v8 = vadd.f32 %v1524_v5, %v1848_v6  ;;  %v968_v10 = vmul.f32 %v1854_v22, %v929_v1  ;;  %v1037_v14 = vsel %vm412_vm0, %v963_v4, 0.0 }
 0x1d6   : > { %v875_v11 = vpop.f32.mrf.mxu1  ;;  %1035 = vadd.xlane.f32.xlu0 %v1034_v9 }
 0x1d7   : > { %v930_v12 = vmax.f32 %v884_v8, 0.0  ;;  %v876_v13 = vadd.f32 %v1848_v6, %v875_v11  ;;  %v1052_v16 = vsel %vm412_vm0, %v968_v10, 0.0  ;;  %v966_v20 = vmul.f32 %v1854_v22, %v927_v7 }
 0x1d8   : > { %v1527_v15 = vpop.f32.mrf.mxu1  ;;  %1038 = vadd.xlane.f32.xlu1 %v1037_v14 }
 0x1d9   : > { %v928_v17 = vmax.f32 %v876_v13, 0.0  ;;  %v897_v18 = vadd.f32 %v1527_v15, %v1848_v6  ;;  %v969_v19 = vmul.f32 %v1854_v22, %v930_v12  ;;  %v1046_v30 = vsel %vm412_vm0, %v966_v20, 0.0 }
 0x1da   : > { %v888_v21 = vpop.f32.mrf.mxu1  ;;  %1053 = vadd.xlane.f32.xlu0 %v1052_v16 }
 0x1db   : > { %v889_v23 = vadd.f32 %v1848_v6, %v888_v21  ;;  %v1055_v24 = vsel %vm412_vm0, %v969_v19, 0.0  ;;  %v967_v25 = vmul.f32 %v1854_v22, %v928_v17  ;;  %v933_v27 = vmax.f32 %v897_v18, 0.0 }
 0x1dc   : > { %v1528_v26 = vpop.f32.mrf.mxu1  ;;  %1056 = vadd.xlane.f32.xlu1 %v1055_v24 }
 0x1dd   : > { %v931_v28 = vmax.f32 %v889_v23, 0.0  ;;  %v900_v29 = vadd.f32 %v1528_v26, %v1848_v6  ;;  %v1049_v34 = vsel %vm412_vm0, %v967_v25, 0.0  ;;  %v972_v38 = vmul.f32 %v1854_v22, %v933_v27 }
 0x1de   : > { %v891_v31 = vpop.f32.mrf.mxu1  ;;  %1047 = vadd.xlane.f32.xlu0 %v1046_v30 }
 0x1df   : > { %v934_v32 = vmax.f32 %v900_v29, 0.0  ;;  %v892_v33 = vadd.f32 %v1848_v6, %v891_v31  ;;  %v970_v35 = vmul.f32 %v1854_v22, %v931_v28  ;;  %v1064_v42 = vsel %vm412_vm0, %v972_v38, 0.0 }
 0x1e0   : > { %1050 = vadd.xlane.f32.xlu1 %v1049_v34 }
 0x1e1   : > { %v932_v36 = vmax.f32 %v892_v33, 0.0  ;;  %v1058_v37 = vsel %vm412_vm0, %v970_v35, 0.0  ;;  %v973_v39 = vmul.f32 %v1854_v22, %v934_v32 }
 0x1e2   : > { %1059 = vadd.xlane.f32.xlu0 %v1058_v37 }
 0x1e3   : > { %v971_v40 = vmul.f32 %v1854_v22, %v932_v36  ;;  %v1067_v6 = vsel %vm412_vm0, %v973_v39, 0.0 }
 0x1e5   : > { %v1061_v41 = vsel %vm412_vm0, %v971_v40, 0.0 }
 0x1e6   : > { %1062 = vadd.xlane.f32.xlu1 %v1061_v41  ;;  %1065 = vadd.xlane.f32.xlu0 %v1064_v42 }
 0x1ea   : > { %1068 = vadd.xlane.f32.xlu1 %v1067_v6 }
 0x231   : > { %v982_v44 = vpop.xlane.xlu1 %981 }
 0x232   : > { %v1079_v45 = vadd.f32 %v1951_v43, %v982_v44 }
 0x233   : > { %v976_v46 = vpop.xlane.xlu0 %975 }
 0x234   : > { %v1111_v47 = vsub.f32 0.0, %v1079_v45  ;;  %v1077_v48 = vadd.f32 %v1951_v43, %v976_v46 }
 0x235   : > { %v985_v49 = vpop.xlane.xlu1 %984 }
 0x236   : > { %v1145_v22 = vmul.f32 1.442695, %v1111_v47  ;;  %v1109_v50 = vsub.f32 0.0, %v1077_v48  ;;  %v1080_v51 = vadd.f32 %v1951_v43, %v985_v49 }
 0x237   : > { %v979_v52 = vpop.xlane.xlu0 %978 }
 0x238   : > { %1556 = vpow2.f32 %v1145_v22  ;;  %v1141_v53 = vmul.f32 1.442695, %v1109_v50  ;;  %v1112_v54 = vsub.f32 0.0, %v1080_v51  ;;  %v1078_v55 = vadd.f32 %v1951_v43, %v979_v52 }
 0x23a   : > { %1558 = vpow2.f32 %v1141_v53  ;;  %v1147_v56 = vmul.f32 1.442695, %v1112_v54  ;;  %v1110_v57 = vsub.f32 0.0, %v1078_v55 }
 0x23b   : > { %v994_v58 = vpop.xlane.xlu0 %993 }
 0x23c   : > { %1560 = vpow2.f32 %v1147_v56  ;;  %v1143_v59 = vmul.f32 1.442695, %v1110_v57  ;;  %v1083_v60 = vadd.f32 %v1951_v43, %v994_v58 }
 0x23d   : > { %v997_v61 = vpop.xlane.xlu1 %996 }
 0x23e   : > { %1562 = vpow2.f32 %v1143_v59  ;;  %v1115_v62 = vsub.f32 0.0, %v1083_v60  ;;  %v1084_v63 = vadd.f32 %v1951_v43, %v997_v61 }
 0x23f   : > { %v988_v0 = vpop.xlane.xlu0 %987 }
 0x240   : > { %v1153_v1 = vmul.f32 1.442695, %v1115_v62  ;;  %v1116_v2 = vsub.f32 0.0, %v1084_v63  ;;  %v1081_v3 = vadd.f32 %v1951_v43, %v988_v0 }
 0x241   : > { %v991_v4 = vpop.xlane.xlu1 %990 }
 0x242   : > { %1564 = vpow2.f32 %v1153_v1  ;;  %v1155_v5 = vmul.f32 1.442695, %v1116_v2  ;;  %v1113_v7 = vsub.f32 0.0, %v1081_v3  ;;  %v1082_v8 = vadd.f32 %v1951_v43, %v991_v4 }
 0x243   : > { %v1006_v9 = vpop.xlane.xlu0 %1005 }
 0x244   : > { %1566 = vpow2.f32 %v1155_v5  ;;  %v1149_v10 = vmul.f32 1.442695, %v1113_v7  ;;  %v1114_v11 = vsub.f32 0.0, %v1082_v8  ;;  %v1087_v12 = vadd.f32 %v1951_v43, %v1006_v9 }
 0x245   : > { %v1557_v13 = vpop.eup %1556  ;;  %v1009_v14 = vpop.xlane.xlu1 %1008 }
 0x246   : > { %v1207_v15 = vadd.f32 1.0, %v1557_v13  ;;  %1568 = vpow2.f32 %v1149_v10  ;;  %v1151_v16 = vmul.f32 1.442695, %v1114_v11  ;;  %v1119_v17 = vsub.f32 0.0, %v1087_v12 }
 0x247   : > { %v1559_v18 = vpop.eup %1558  ;;  %v1088_v19 = vadd.f32 %v1951_v43, %v1009_v14  ;;  %v1000_v20 = vpop.xlane.xlu0 %999 }
 0x248   : > { %1570 = vrcp.f32 %v1207_v15  ;;  %v1205_v21 = vadd.f32 1.0, %v1559_v18  ;;  %v1161_v23 = vmul.f32 1.442695, %v1119_v17  ;;  %v1085_v24 = vadd.f32 %v1951_v43, %v1000_v20 }
 0x249   : > { %v1561_v25 = vpop.eup %1560  ;;  %1572 = vpow2.f32 %v1151_v16  ;;  %v1120_v26 = vsub.f32 0.0, %v1088_v19  ;;  %v1003_v27 = vpop.xlane.xlu1 %1002 }
 0x24a   : > { %1574 = vrcp.f32 %v1205_v21  ;;  %v1208_v28 = vadd.f32 1.0, %v1561_v25  ;;  %v1117_v29 = vsub.f32 0.0, %v1085_v24  ;;  %v1086_v30 = vadd.f32 %v1951_v43, %v1003_v27 }
 0x24b   : > { %v1563_v31 = vpop.eup %1562  ;;  %1576 = vpow2.f32 %v1161_v23  ;;  %v1163_v32 = vmul.f32 1.442695, %v1120_v26  ;;  %v1018_v33 = vpop.xlane.xlu0 %1017 }
 0x24c   : > { %1578 = vrcp.f32 %v1208_v28  ;;  %v1206_v34 = vadd.f32 1.0, %v1563_v31  ;;  %v1157_v35 = vmul.f32 1.442695, %v1117_v29  ;;  %v1118_v36 = vsub.f32 0.0, %v1086_v30 }
 0x24d   : > { %1580 = vpow2.f32 %v1163_v32  ;;  %v1091_v37 = vadd.f32 %v1951_v43, %v1018_v33  ;;  %v1021_v38 = vpop.xlane.xlu1 %1020 }
 0x24e   : > { %1582 = vrcp.f32 %v1206_v34  ;;  %v1159_v39 = vmul.f32 1.442695, %v1118_v36  ;;  %v1092_v40 = vadd.f32 %v1951_v43, %v1021_v38 }
 0x24f   : > { %v1565_v41 = vpop.eup %1564  ;;  %1584 = vpow2.f32 %v1157_v35  ;;  %v1123_v42 = vsub.f32 0.0, %v1091_v37  ;;  %v1012_v6 = vpop.xlane.xlu0 %1011 }
 0x250   : > { %v1211_v44 = vadd.f32 1.0, %v1565_v41  ;;  %1586 = vpow2.f32 %v1159_v39  ;;  %v1124_v45 = vsub.f32 0.0, %v1092_v40  ;;  %v1089_v46 = vadd.f32 %v1951_v43, %v1012_v6 }
 0x251   : > { %v1567_v47 = vpop.eup %1566  ;;  %v1169_v48 = vmul.f32 1.442695, %v1123_v42  ;;  %v1015_v49 = vpop.xlane.xlu1 %1014 }
 0x252   : > { %1588 = vrcp.f32 %v1211_v44  ;;  %v1212_v22 = vadd.f32 1.0, %v1567_v47  ;;  %v1171_v50 = vmul.f32 1.442695, %v1124_v45  ;;  %v1121_v51 = vsub.f32 0.0, %v1089_v46 }
 0x253   : > { %v1569_v52 = vpop.eup %1568  ;;  %1590 = vpow2.f32 %v1169_v48  ;;  %v1090_v53 = vadd.f32 %v1951_v43, %v1015_v49  ;;  %v1030_v54 = vpop.xlane.xlu0 %1029 }
 0x254   : > { %1592 = vrcp.f32 %v1212_v22  ;;  %v1209_v55 = vadd.f32 1.0, %v1569_v52  ;;  %v1165_v56 = vmul.f32 1.442695, %v1121_v51  ;;  %v1095_v57 = vadd.f32 %v1951_v43, %v1030_v54 }
 0x255   : > { %v1571_v58 = vpop.eup %1570  ;;  %1594 = vpow2.f32 %v1171_v50  ;;  %v1122_v59 = vsub.f32 0.0, %v1090_v53  ;;  %v1033_v60 = vpop.xlane.xlu1 %1032 }
 0x256   : > { %v1573_v61 = vpop.eup %1572  ;;  %1272 = vst.msk [vmem:[%s1972_s24 + $0x10] sm:$0xff] %vm1269_vm2, %v1571_v58  ;;  %1596 = vrcp.f32 %v1209_v55  ;;  %v1127_v62 = vsub.f32 0.0, %v1095_v57  ;;  %v1096_v63 = vadd.f32 %v1951_v43, %v1033_v60 }
 0x257   : > { %v1575_v0 = vpop.eup %1574  ;;  %v1210_v1 = vadd.f32 1.0, %v1573_v61  ;;  %1598 = vpow2.f32 %v1165_v56  ;;  %v1167_v2 = vmul.f32 1.442695, %v1122_v59  ;;  %v1024_v3 = vpop.xlane.xlu0 %1023 }
 0x258   : > { %v1577_v4 = vpop.eup %1576  ;;  %1270 = vst.msk [vmem:[%s1972_s24] sm:$0xff] %vm1269_vm2, %v1575_v0  ;;  %v1177_v5 = vmul.f32 1.442695, %v1127_v62  ;;  %v1128_v7 = vsub.f32 0.0, %v1096_v63  ;;  %v1093_v8 = vadd.f32 %v1951_v43, %v1024_v3 }
 0x259   : > { %v1579_v9 = vpop.eup %1578  ;;  %1600 = vrcp.f32 %v1210_v1  ;;  %v1215_v10 = vadd.f32 1.0, %v1577_v4  ;;  %v1027_v11 = vpop.xlane.xlu1 %1026 }
 0x25a   : > { %v1581_v12 = vpop.eup %1580  ;;  %1273 = vst.msk [vmem:[%s1972_s24 + $0x18] sm:$0xff] %vm1269_vm2, %v1579_v9  ;;  %1602 = vpow2.f32 %v1167_v2  ;;  %v1179_v13 = vmul.f32 1.442695, %v1128_v7  ;;  %v1125_v14 = vsub.f32 0.0, %v1093_v8  ;;  %v1094_v15 = vadd.f32 %v1951_v43, %v1027_v11 }
 0x25b   : > { %v1583_v16 = vpop.eup %1582  ;;  %1604 = vrcp.f32 %v1215_v10  ;;  %v1216_v17 = vadd.f32 1.0, %v1581_v12  ;;  %v1042_v18 = vpop.xlane.xlu0 %1041 }
 0x25c   : > { %v1585_v19 = vpop.eup %1584  ;;  %1271 = vst.msk [vmem:[%s1972_s24 + $0x8] sm:$0xff] %vm1269_vm2, %v1583_v16  ;;  %1606 = vpow2.f32 %v1177_v5  ;;  %v1126_v20 = vsub.f32 0.0, %v1094_v15  ;;  %v1099_v21 = vadd.f32 %v1951_v43, %v1042_v18  ;;  %v1173_v25 = vmul.f32 1.442695, %v1125_v14 }
 0x25d   : > { %v1587_v23 = vpop.eup %1586  ;;  %1608 = vrcp.f32 %v1216_v17  ;;  %v1213_v24 = vadd.f32 1.0, %v1585_v19  ;;  %v1045_v26 = vpop.xlane.xlu1 %1044 }
 0x25e   : > { %v1214_v27 = vadd.f32 1.0, %v1587_v23  ;;  %1610 = vpow2.f32 %v1179_v13  ;;  %v1175_v28 = vmul.f32 1.442695, %v1126_v20  ;;  %v1131_v29 = vsub.f32 0.0, %v1099_v21 }
 0x25f   : > { %v1589_v30 = vpop.eup %1588  ;;  %1612 = vrcp.f32 %v1213_v24  ;;  %v1100_v31 = vadd.f32 %v1951_v43, %v1045_v26  ;;  %v1036_v32 = vpop.xlane.xlu0 %1035 }
 0x260   : > { %v1591_v33 = vpop.eup %1590  ;;  %1276 = vst.msk [vmem:[%s1972_s24 + $0x30] sm:$0xff] %vm1269_vm2, %v1589_v30  ;;  %1614 = vrcp.f32 %v1214_v27  ;;  %v1185_v34 = vmul.f32 1.442695, %v1131_v29  ;;  %v1097_v35 = vadd.f32 %v1951_v43, %v1036_v32 }
 0x261   : > { %v1593_v36 = vpop.eup %1592  ;;  %v1219_v37 = vadd.f32 1.0, %v1591_v33  ;;  %1616 = vpow2.f32 %v1173_v25  ;;  %v1132_v38 = vsub.f32 0.0, %v1100_v31  ;;  %v1039_v39 = vpop.xlane.xlu1 %1038 }
 0x262   : > { %v1595_v40 = vpop.eup %1594  ;;  %1277 = vst.msk [vmem:[%s1972_s24 + $0x38] sm:$0xff] %vm1269_vm2, %v1593_v36  ;;  %1618 = vpow2.f32 %v1175_v28  ;;  %v1129_v41 = vsub.f32 0.0, %v1097_v35  ;;  %v1098_v42 = vadd.f32 %v1951_v43, %v1039_v39 }
 0x263   : > { %v1597_v6 = vpop.eup %1596  ;;  %1620 = vrcp.f32 %v1219_v37  ;;  %v1220_v44 = vadd.f32 1.0, %v1595_v40  ;;  %v1187_v45 = vmul.f32 1.442695, %v1132_v38  ;;  %v1054_v46 = vpop.xlane.xlu0 %1053 }
 0x264   : > { %v1599_v47 = vpop.eup %1598  ;;  %1274 = vst.msk [vmem:[%s1972_s24 + $0x20] sm:$0xff] %vm1269_vm2, %v1597_v6  ;;  %1622 = vpow2.f32 %v1185_v34  ;;  %v1181_v48 = vmul.f32 1.442695, %v1129_v41  ;;  %v1130_v49 = vsub.f32 0.0, %v1098_v42  ;;  %v1103_v22 = vadd.f32 %v1951_v43, %v1054_v46 }
 0x265   : > { %1624 = vrcp.f32 %v1220_v44  ;;  %v1217_v50 = vadd.f32 1.0, %v1599_v47  ;;  %v1057_v51 = vpop.xlane.xlu1 %1056 }
 0x266   : > { %v1601_v52 = vpop.eup %1600  ;;  %1626 = vpow2.f32 %v1187_v45  ;;  %v1183_v53 = vmul.f32 1.442695, %v1130_v49  ;;  %v1135_v54 = vsub.f32 0.0, %v1103_v22  ;;  %v1104_v55 = vadd.f32 %v1951_v43, %v1057_v51 }
 0x267   : > { %v1603_v56 = vpop.eup %1602  ;;  %1275 = vst.msk [vmem:[%s1972_s24 + $0x28] sm:$0xff] %vm1269_vm2, %v1601_v52  ;;  %1628 = vrcp.f32 %v1217_v50  ;;  %v1048_v57 = vpop.xlane.xlu0 %1047 }
 0x268   : > { %v1605_v58 = vpop.eup %1604  ;;  %v1218_v59 = vadd.f32 1.0, %v1603_v56  ;;  %1630 = vpow2.f32 %v1181_v48  ;;  %v1193_v60 = vmul.f32 1.442695, %v1135_v54  ;;  %v1136_v61 = vsub.f32 0.0, %v1104_v55 }
 0x269   : > { %v1607_v62 = vpop.eup %1606  ;;  %1280 = vst.msk [vmem:[%s1972_s24 + $0x50] sm:$0xff] %vm1269_vm2, %v1605_v58  ;;  %1632 = vpow2.f32 %v1183_v53  ;;  %v1101_v63 = vadd.f32 %v1951_v43, %v1048_v57  ;;  %v1051_v0 = vpop.xlane.xlu1 %1050 }
 0x26a   : > { %v1609_v1 = vpop.eup %1608  ;;  %1634 = vrcp.f32 %v1218_v59  ;;  %v1223_v2 = vadd.f32 1.0, %v1607_v62  ;;  %v1195_v3 = vmul.f32 1.442695, %v1136_v61  ;;  %v1102_v4 = vadd.f32 %v1951_v43, %v1051_v0 }
 0x26b   : > { %v1611_v5 = vpop.eup %1610  ;;  %1281 = vst.msk [vmem:[%s1972_s24 + $0x58] sm:$0xff] %vm1269_vm2, %v1609_v1  ;;  %1636 = vpow2.f32 %v1193_v60  ;;  %v1133_v7 = vsub.f32 0.0, %v1101_v63  ;;  %v1060_v8 = vpop.xlane.xlu0 %1059 }
 0x26c   : > { %v1613_v9 = vpop.eup %1612  ;;  %1638 = vrcp.f32 %v1223_v2  ;;  %v1224_v10 = vadd.f32 1.0, %v1611_v5  ;;  %v1134_v11 = vsub.f32 0.0, %v1102_v4  ;;  %v1105_v12 = vadd.f32 %v1951_v43, %v1060_v8 }
 0x26d   : > { %v1615_v13 = vpop.eup %1614  ;;  %1278 = vst.msk [vmem:[%s1972_s24 + $0x40] sm:$0xff] %vm1269_vm2, %v1613_v9  ;;  %1640 = vpow2.f32 %v1195_v3  ;;  %v1189_v14 = vmul.f32 1.442695, %v1133_v7 }
 0x26e   : > { %v1617_v15 = vpop.eup %1616  ;;  %1279 = vst.msk [vmem:[%s1972_s24 + $0x48] sm:$0xff] %vm1269_vm2, %v1615_v13  ;;  %1642 = vrcp.f32 %v1224_v10  ;;  %v1191_v16 = vmul.f32 1.442695, %v1134_v11  ;;  %v1137_v17 = vsub.f32 0.0, %v1105_v12 }
 0x26f   : > { %v1619_v18 = vpop.eup %1618  ;;  %v1221_v19 = vadd.f32 1.0, %v1617_v15  ;;  %1644 = vpow2.f32 %v1189_v14  ;;  %v1063_v20 = vpop.xlane.xlu1 %1062 }
 0x270   : > { %v1066_v21 = vpop.xlane.xlu0 %1065  ;;  %v1621_v23 = vpop.eup %1620  ;;  %v1222_v24 = vadd.f32 1.0, %v1619_v18  ;;  %1646 = vpow2.f32 %v1191_v16  ;;  %v1197_v25 = vmul.f32 1.442695, %v1137_v17  ;;  %v1106_v26 = vadd.f32 %v1951_v43, %v1063_v20 }
 0x271   : > { %v1623_v27 = vpop.eup %1622  ;;  %1284 = vst.msk [vmem:[%s1972_s24 + $0x70] sm:$0xff] %vm1269_vm2, %v1621_v23  ;;  %1648 = vrcp.f32 %v1221_v19  ;;  %v1107_v28 = vadd.f32 %v1951_v43, %v1066_v21 }
 0x272   : > { %v1625_v29 = vpop.eup %1624  ;;  %1650 = vrcp.f32 %v1222_v24  ;;  %v1227_v30 = vadd.f32 1.0, %v1623_v27  ;;  %v1138_v31 = vsub.f32 0.0, %v1106_v26 }
 0x273   : > { %v1627_v32 = vpop.eup %1626  ;;  %1285 = vst.msk [vmem:[%s1972_s24 + $0x78] sm:$0xff] %vm1269_vm2, %v1625_v29  ;;  %1652 = vpow2.f32 %v1197_v25  ;;  %v1139_v33 = vsub.f32 0.0, %v1107_v28  ;;  %v1069_v34 = vpop.xlane.xlu1 %1068 }
 0x274   : > { %v1629_v35 = vpop.eup %1628  ;;  %1654 = vrcp.f32 %v1227_v30  ;;  %v1228_v36 = vadd.f32 1.0, %v1627_v32  ;;  %v1199_v37 = vmul.f32 1.442695, %v1138_v31  ;;  %v1108_v38 = vadd.f32 %v1951_v43, %v1069_v34 }
 0x275   : > { %v1631_v39 = vpop.eup %1630  ;;  %1282 = vst.msk [vmem:[%s1972_s24 + $0x60] sm:$0xff] %vm1269_vm2, %v1629_v35  ;;  %v1201_v42 = vmul.f32 1.442695, %v1139_v33 }
 0x276   : > { %v1633_v40 = vpop.eup %1632  ;;  %1656 = vrcp.f32 %v1228_v36  ;;  %v1225_v41 = vadd.f32 1.0, %v1631_v39  ;;  %v1140_v6 = vsub.f32 0.0, %v1108_v38 }
 0x277   : > { %v1635_v44 = vpop.eup %1634  ;;  %v1226_v45 = vadd.f32 1.0, %v1633_v40  ;;  %1658 = vpow2.f32 %v1199_v37 }
 0x278   : > { %v1637_v46 = vpop.eup %1636  ;;  %1283 = vst.msk [vmem:[%s1972_s24 + $0x68] sm:$0xff] %vm1269_vm2, %v1635_v44  ;;  %1660 = vrcp.f32 %v1225_v41  ;;  %v1203_v47 = vmul.f32 1.442695, %v1140_v6 }
 0x279   : > { %v1639_v48 = vpop.eup %1638  ;;  %1662 = vrcp.f32 %v1226_v45  ;;  %v1231_v43 = vadd.f32 1.0, %v1637_v46 }
 0x27a   : > { %v1641_v49 = vpop.eup %1640  ;;  %1288 = vst.msk [vmem:[%s1972_s24 + $0x90] sm:$0xff] %vm1269_vm2, %v1639_v48  ;;  %1664 = vpow2.f32 %v1201_v42 }
 0x27b   : > { %v1643_v22 = vpop.eup %1642  ;;  %1666 = vrcp.f32 %v1231_v43  ;;  %v1232_v50 = vadd.f32 1.0, %v1641_v49 }
 0x27c   : > { %v1645_v51 = vpop.eup %1644  ;;  %1289 = vst.msk [vmem:[%s1972_s24 + $0x98] sm:$0xff] %vm1269_vm2, %v1643_v22  ;;  %1668 = vpow2.f32 %v1203_v47 }
 0x27d   : > { %v1647_v52 = vpop.eup %1646  ;;  %1670 = vrcp.f32 %v1232_v50  ;;  %v1229_v53 = vadd.f32 1.0, %v1645_v51 }
 0x27e   : > { %v1649_v54 = vpop.eup %1648  ;;  %v1230_v55 = vadd.f32 1.0, %v1647_v52 }
 0x27f   : > { %v1651_v56 = vpop.eup %1650  ;;  %1286 = vst.msk [vmem:[%s1972_s24 + $0x80] sm:$0xff] %vm1269_vm2, %v1649_v54  ;;  %1672 = vrcp.f32 %v1229_v53 }
 0x280   : > { %v1653_v57 = vpop.eup %1652  ;;  %1287 = vst.msk [vmem:[%s1972_s24 + $0x88] sm:$0xff] %vm1269_vm2, %v1651_v56  ;;  %1674 = vrcp.f32 %v1230_v55 }
 0x281   : > { %v1655_v58 = vpop.eup %1654  ;;  %v1233_v59 = vadd.f32 1.0, %v1653_v57 }
 0x282   : > { %1292 = vst.msk [vmem:[%s1972_s24 + $0xb0] sm:$0xff] %vm1269_vm2, %v1655_v58 }
 0x283   : > { %v1657_v60 = vpop.eup %1656  ;;  %1676 = vrcp.f32 %v1233_v59 }
 0x284   : > { %v1659_v61 = vpop.eup %1658  ;;  %1293 = vst.msk [vmem:[%s1972_s24 + $0xb8] sm:$0xff] %vm1269_vm2, %v1657_v60 }
 0x285   : > { %v1661_v62 = vpop.eup %1660  ;;  %v1234_v63 = vadd.f32 1.0, %v1659_v61 }
 0x286   : > { %v1663_v0 = vpop.eup %1662  ;;  %1290 = vst.msk [vmem:[%s1972_s24 + $0xa0] sm:$0xff] %vm1269_vm2, %v1661_v62 }
 0x287   : > { %v1665_v1 = vpop.eup %1664  ;;  %1291 = vst.msk [vmem:[%s1972_s24 + $0xa8] sm:$0xff] %vm1269_vm2, %v1663_v0  ;;  %1678 = vrcp.f32 %v1234_v63 }
 0x288   : > { %v1667_v2 = vpop.eup %1666  ;;  %v1235_v3 = vadd.f32 1.0, %v1665_v1 }
 0x289   : > { %v1669_v4 = vpop.eup %1668  ;;  %1296 = vst.msk [vmem:[%s1972_s24 + $0xd0] sm:$0xff] %vm1269_vm2, %v1667_v2 }
 0x28a   : > { %v1671_v5 = vpop.eup %1670  ;;  %1680 = vrcp.f32 %v1235_v3  ;;  %v1236_v7 = vadd.f32 1.0, %v1669_v4 }
 0x28b   : > { %1297 = vst.msk [vmem:[%s1972_s24 + $0xd8] sm:$0xff] %vm1269_vm2, %v1671_v5 }
 0x28c   : > { %v1673_v8 = vpop.eup %1672  ;;  %1682 = vrcp.f32 %v1236_v7 }
 0x28d   : > { %v1675_v9 = vpop.eup %1674  ;;  %1294 = vst.msk [vmem:[%s1972_s24 + $0xc0] sm:$0xff] %vm1269_vm2, %v1673_v8 }
 0x28e   : > { %1295 = vst.msk [vmem:[%s1972_s24 + $0xc8] sm:$0xff] %vm1269_vm2, %v1675_v9 }
 0x290   : > { %v1677_v10 = vpop.eup %1676 }
 0x291   : > { %1298 = vst.msk [vmem:[%s1972_s24 + $0xe0] sm:$0xff] %vm1269_vm2, %v1677_v10 }
 0x294   : > { %v1679_v11 = vpop.eup %1678 }
 0x295   : > { %1299 = vst.msk [vmem:[%s1972_s24 + $0xe8] sm:$0xff] %vm1269_vm2, %v1679_v11 }
 0x297   : > { %v1681_v12 = vpop.eup %1680 }
 0x298   : > { %1300 = vst.msk [vmem:[%s1972_s24 + $0xf0] sm:$0xff] %vm1269_vm2, %v1681_v12 }
 0x299   : > { %v1683_v13 = vpop.eup %1682 }
 0x29a   : > { %1301 = vst.msk [vmem:[%s1972_s24 + $0xf8] sm:$0xff] %vm1269_vm2, %v1683_v13 }
 0x29b PF: > { %s19_s26 = sadd.s32 1, %s1690_s26  }
 0x29c   : > { %p16_p4 = scmp.ge.s32.totalorder %s19_s26, 6  }
 0x29e   :  { %18 = sbr.rel (!%p16_p4) target bundleno = 3 (0x3), region = 78 }

</bundles_post_ra>
